<compile_context>
chip_gen: v7x
topology: tpu7x:2x2x1
jax: 0.10.0
libtpu: 0.0.40
codegen_flags: <defaults>
</compile_context>

<pallas_src>
import functools

import jax
import jax.numpy as jnp
from jax.experimental import pallas as pl
from jax.experimental.pallas import tpu as pltpu


def _round_up(x, m):
    return (x + m - 1) // m * m


def _vmem_capacity_bytes():
    try:
        return int(pltpu.get_tpu_info().vmem_capacity_bytes)
    except Exception:
        return 64 * 1024 * 1024  # conservative default (v7x per-TC VMEM)


# ----------------------------- kernels ---------------------------------------


def _cam_fused_kernel(gamma_ref, x_ref, o_ref, *, mxu_dtype):
    """Single-pass: whole (bt, C, Npad) slab resident; X read from HBM once."""
    x = x_ref[...]                                            # (bt, C, Np)
    xm = x if mxu_dtype is None else x.astype(mxu_dtype)

    # energy[b, c, d] = sum_n X[b, c, n] * X[b, d, n]
    energy = jnp.einsum("bcn,bdn->bcd", xm, xm, preferred_element_type=jnp.float32)

    # softmax(rowmax(E) - E) == exp(rowmin(E) - E) / rowsum(exp(rowmin(E) - E))
    m = jnp.min(energy, axis=-1, keepdims=True)
    e = jnp.exp(m - energy)
    inv = pl.reciprocal(jnp.sum(e, axis=-1, keepdims=True), approx=False)
    attn = (e * inv) * gamma_ref[0]                           # fold gamma into attention
    am = attn if mxu_dtype is None else attn.astype(mxu_dtype)

    out = jnp.einsum("bcd,bdn->bcn", am, xm, preferred_element_type=jnp.float32)
    o_ref[...] = (out + x.astype(jnp.float32)).astype(o_ref.dtype)


def _cam_attn_kernel(gamma_ref, x_ref, attn_ref, acc_ref, *, mxu_dtype):
    """Two-pass kernel A: accumulate energy over spatial chunks, softmax at the end."""
    j = pl.program_id(1)

    @pl.when(j == 0)
    def _init():
        acc_ref[...] = jnp.zeros_like(acc_ref)

    x = x_ref[...]                                            # (bt, C, TN)
    xm = x if mxu_dtype is None else x.astype(mxu_dtype)
    acc_ref[...] += jnp.einsum("bcn,bdn->bcd", xm, xm,
                               preferred_element_type=jnp.float32)

    @pl.when(j == pl.num_programs(1) - 1)
    def _finalize():
        energy = acc_ref[...]                                 # (bt, C, C) f32
        m = jnp.min(energy, axis=-1, keepdims=True)
        e = jnp.exp(m - energy)
        inv = pl.reciprocal(jnp.sum(e, axis=-1, keepdims=True), approx=False)
        attn_ref[...] = ((e * inv) * gamma_ref[0]).astype(attn_ref.dtype)


def _cam_apply_kernel(attn_ref, x_ref, o_ref, *, mxu_dtype):
    """Two-pass kernel B: out_chunk = (gamma*attn) @ X_chunk + X_chunk."""
    x = x_ref[...]                                            # (bt, C, TN)
    xm = x if mxu_dtype is None else x.astype(mxu_dtype)
    am = attn_ref[...]
    if mxu_dtype is not None:
        am = am.astype(mxu_dtype)                             # no-op: stored in mxu_dtype
    out = jnp.einsum("bcd,bdn->bcn", am, xm, preferred_element_type=jnp.float32)
    o_ref[...] = (out + x.astype(jnp.float32)).astype(o_ref.dtype)


# ----------------------------- wrapper ----------------------------------------


def cam_forward(x, gamma, *, mxu_dtype=None, spatial_tile=None, force_two_pass=False):
    """x: (B, C, H, W), gamma: (1,). Returns gamma * (channel-softmax-attn @ x) + x."""
    B, C, H, W = x.shape
    N = H * W
    itemsize = jnp.dtype(x.dtype).itemsize
    gamma = jnp.asarray(gamma, jnp.float32).reshape((1,))

    n128 = _round_up(N, 128)
    c_sub = _round_up(C, 8)
    c_lane = _round_up(C, 128)

    cap = _vmem_capacity_bytes()
    if cap >= (128 << 20):          # v5e / v6e: use most of the 128 MiB
        budget = 96 << 20
    else:                           # v7x (64 MiB per TC) or unknown: stay conservative
        budget = max(24 << 20, int(cap * 0.60))

    def pick_bt(fits):
        divs = [d for d in range(1, B + 1) if B % d == 0 and fits(d)]
        if not divs:
            return None
        pref = [d for d in divs if B // d >= 2]   # keep >=2 batch blocks for v7x megacore
        return max(pref) if pref else max(divs)

    # ---------------- single-pass fast path (X read once) ----------------
    def fused_bytes(bt):
        io = 4 * bt * c_sub * n128 * itemsize            # double-buffered in + out slabs
        f32_tmp = 2 * bt * c_sub * n128 * 4              # f32 'out' temporary + cast slack
        cc = 4 * bt * c_sub * c_lane * 4                 # energy / exp / attn temporaries
        return io + f32_tmp + cc

    if not force_two_pass:
        bt = pick_bt(lambda d: fused_bytes(d) <= budget)
        if bt is not None:
            x_flat = x.reshape(B, C, N)
            if n128 != N:
                x_flat = jnp.pad(x_flat, ((0, 0), (0, 0), (0, n128 - N)))
            vmem_limit = int(min(int(cap * 0.9),
                                 max(32 << 20, fused_bytes(bt) + (16 << 20))))
            out_flat = pl.pallas_call(
                functools.partial(_cam_fused_kernel, mxu_dtype=mxu_dtype),
                out_shape=jax.ShapeDtypeStruct((B, C, n128), x.dtype),
                grid=(B // bt,),
                in_specs=[
                    pl.BlockSpec(memory_space=pltpu.MemorySpace.SMEM),      # gamma
                    pl.BlockSpec((bt, C, n128), lambda b: (b, 0, 0)),       # x slab
                ],
                out_specs=pl.BlockSpec((bt, C, n128), lambda b: (b, 0, 0)),
                compiler_params=pltpu.CompilerParams(
                    dimension_semantics=("parallel",),
                    vmem_limit_bytes=vmem_limit,
                ),
            )(gamma, x_flat)
            if n128 != N:
                out_flat = out_flat[:, :, :N]
            return out_flat.reshape(B, C, H, W)

    # ---------------- two-pass fallback (spatially chunked) ----------------
    def two_pass_bytes(bt, tn):
        x_bufs = 6 * bt * c_sub * tn * itemsize          # x in (A,B) + out (B), double-buffered
        cc = 8 * bt * c_sub * c_lane * 4                 # acc scratch + attn buffers
        return x_bufs + cc

    bt = pick_bt(lambda d: two_pass_bytes(d, 128) <= budget // 2) or 1

    if spatial_tile is not None:
        tn_target = max(128, _round_up(min(int(spatial_tile), n128), 128))
    else:
        cc_bytes = 8 * bt * c_sub * c_lane * 4
        avail = max(budget - cc_bytes, 6 * bt * c_sub * 128 * itemsize)
        tn_target = max(128, min(min(n128, 2048),
                                 (avail // (6 * bt * c_sub * itemsize)) // 128 * 128))

    nc = -(-n128 // tn_target)
    tn = _round_up(-(-n128 // nc), 128)
    n_pad = tn * nc

    x_flat = x.reshape(B, C, N)
    if n_pad != N:
        x_flat = jnp.pad(x_flat, ((0, 0), (0, 0), (0, n_pad - N)))

    attn_dtype = mxu_dtype if mxu_dtype is not None else jnp.float32
    vmem_limit = int(min(int(cap * 0.9),
                         max(32 << 20, two_pass_bytes(bt, tn) + (16 << 20))))
    cparams = pltpu.CompilerParams(
        dimension_semantics=("parallel", "arbitrary"),
        vmem_limit_bytes=vmem_limit,
    )

    # Pass 1: attention (gamma folded in), energy accumulated over spatial chunks.
    attn = pl.pallas_call(
        functools.partial(_cam_attn_kernel, mxu_dtype=mxu_dtype),
        out_shape=jax.ShapeDtypeStruct((B, C, C), attn_dtype),
        grid=(B // bt, nc),
        in_specs=[
            pl.BlockSpec(memory_space=pltpu.MemorySpace.SMEM),              # gamma
            pl.BlockSpec((bt, C, tn), lambda b, j: (b, 0, j)),              # x chunk
        ],
        out_specs=pl.BlockSpec((bt, C, C), lambda b, j: (b, 0, 0)),
        scratch_shapes=[pltpu.VMEM((bt, C, C), jnp.float32)],
        compiler_params=cparams,
    )(gamma, x_flat)

    # Pass 2: stream out_chunk = attn @ X_chunk + X_chunk.
    out_flat = pl.pallas_call(
        functools.partial(_cam_apply_kernel, mxu_dtype=mxu_dtype),
        out_shape=jax.ShapeDtypeStruct((B, C, n_pad), x.dtype),
        grid=(B // bt, nc),
        in_specs=[
            pl.BlockSpec((bt, C, C), lambda b, j: (b, 0, 0)),               # attention
            pl.BlockSpec((bt, C, tn), lambda b, j: (b, 0, j)),              # x chunk
        ],
        out_specs=pl.BlockSpec((bt, C, tn), lambda b, j: (b, 0, j)),
        compiler_params=cparams,
    )(attn, x_flat)

    if n_pad != N:
        out_flat = out_flat[:, :, :N]
    return out_flat.reshape(B, C, H, W)


# ----------------------------- reference & tests -------------------------------


def cam_reference(x, gamma):
    """Pure-JAX reference matching the PyTorch CAM forward."""
    B, C, H, W = x.shape
    q = x.reshape(B, C, -1)                              # (B, C, N)
    energy = jnp.einsum("bcn,bdn->bcd", q, q)            # (B, C, C)
    energy_new = jnp.max(energy, axis=-1, keepdims=True) - energy
    attn = jax.nn.softmax(energy_new, axis=-1)
    out = jnp.einsum("bcd,bdn->bcn", attn, q).reshape(B, C, H, W)
    return gamma[0] * out + x


if __name__ == "__main__":
    key = jax.random.PRNGKey(0)
    B, C, H, W = 2, 4, 16, 16
    x = jax.random.normal(key, (B, C, H, W), dtype=jnp.float32)

    # 1) gamma init per CAM.__init__ (zeros): output must equal the input.
    gamma0 = jnp.zeros((1,), dtype=jnp.float32)
    out0 = jax.block_until_ready(cam_forward(x, gamma0))
    assert out0.shape == (B, C, H, W)
    assert jnp.allclose(out0, cam_reference(x, gamma0), atol=1e-5, rtol=1e-5), \
        "mismatch (gamma=0)"

    # 2) nonzero gamma on the single-pass fast path (X read once from HBM).
    gamma1 = jnp.full((1,), 0.5, dtype=jnp.float32)
    ref1 = cam_reference(x, gamma1)
    out1 = jax.block_until_ready(cam_forward(x, gamma1))
    assert jnp.allclose(out1, ref1, atol=2e-3, rtol=2e-3), "mismatch (fused path)"

    # 3) forced two-pass fallback with 2 spatial chunks: covers the cross-chunk
    #    energy accumulation + per-batch-block scratch re-init.
    out2 = jax.block_until_ready(
        cam_forward(x, gamma1, force_two_pass=True, spatial_tile=128))
    assert jnp.allclose(out2, ref1, atol=2e-3, rtol=2e-3), "mismatch (two-pass path)"

    # 4) non-128-aligned spatial size (N = 100) exercises lane padding + slicing.
    x2 = jax.random.normal(jax.random.split(key)[1], (2, 8, 10, 10), dtype=jnp.float32)
    gamma2 = jnp.full((1,), 0.7, dtype=jnp.float32)
    out3 = jax.block_until_ready(cam_forward(x2, gamma2))
    assert jnp.allclose(out3, cam_reference(x2, gamma2), atol=2e-3, rtol=2e-3), \
        "mismatch (padded N)"

    # 5) bf16 MXU-operand path (f32 accumulation/softmax): execution coverage only;
    #    numerics intentionally differ slightly from the f32 reference.
    out4 = jax.block_until_ready(cam_forward(x, gamma1, mxu_dtype=jnp.bfloat16))
    assert out4.shape == (B, C, H, W) and bool(jnp.all(jnp.isfinite(out4)))

    print("KERNEL_OK")
</pallas_src>

<mosaic_0001>
module attributes {stable_mosaic.version = 11 : i64} {
  func.func @_cam_fused_kernel(%arg0: i32, %arg1: memref<1xf32, #tpu.memory_space<smem>>, %arg2: memref<1x4x256xf32, #tpu.memory_space<vmem>>, %arg3: memref<1x4x256xf32, #tpu.memory_space<vmem>>) attributes {dimension_semantics = [#tpu.dimension_semantics<parallel>], iteration_bounds = array<i64: 2>, scalar_prefetch = 0 : i64, scratch_operands = 0 : i64, tpu.core_type = #tpu.core_type<tc>, window_params = [{transform_indices = @transform_0, window_bounds = array<i64: 1>}, {transform_indices = @transform_1, window_bounds = array<i64: 1, 4, 256>}, {transform_indices = @transform_2, window_bounds = array<i64: 1, 4, 256>}]} {
    %c0 = arith.constant 0 : index
    %c0_0 = arith.constant 0 : index
    %c0_1 = arith.constant 0 : index
    %0 = vector.load %arg2[%c0, %c0_0, %c0_1] : memref<1x4x256xf32, #tpu.memory_space<vmem>>, vector<1x4x256xf32>
    "tpu.trace_start"() <{level = 10 : i32, message = "bcn,bdn->bcd"}> : () -> ()
    %cst = arith.constant dense<0.000000e+00> : vector<1x4x4xf32>
    %1 = tpu.matmul %0, %0, %cst {dimension_numbers = #tpu.dot_dimension_numbers<[2], [2], [1], [1], [0, 0, 0, 1, 1, 1], [0], [0]>} : vector<1x4x256xf32>, vector<1x4x256xf32>, vector<1x4x4xf32> -> vector<1x4x4xf32>
    "tpu.trace_stop"() : () -> ()
    %cst_2 = arith.constant dense<0x7F800000> : vector<1x4xf32>
    %2 = vector.multi_reduction <minimumf>, %1, %cst_2 [2] : vector<1x4x4xf32> to vector<1x4xf32>
    %3 = vector.shape_cast %2 : vector<1x4xf32> to vector<1x4x1xf32>
    %4 = vector.broadcast %3 : vector<1x4x1xf32> to vector<1x4x4xf32>
    %5 = arith.subf %4, %1 : vector<1x4x4xf32>
    %6 = math.exp %5 : vector<1x4x4xf32>
    %cst_3 = arith.constant dense<0.000000e+00> : vector<1x4xf32>
    %7 = vector.multi_reduction <add>, %6, %cst_3 [2] : vector<1x4x4xf32> to vector<1x4xf32>
    %8 = vector.shape_cast %7 : vector<1x4xf32> to vector<1x4x1xf32>
    %9 = tpu.reciprocal %8 : vector<1x4x1xf32> -> vector<1x4x1xf32>
    %10 = vector.broadcast %9 : vector<1x4x1xf32> to vector<1x4x4xf32>
    %11 = arith.mulf %6, %10 : vector<1x4x4xf32>
    %c0_4 = arith.constant 0 : index
    %12 = memref.load %arg1[%c0_4] : memref<1xf32, #tpu.memory_space<smem>>
    %13 = vector.broadcast %12 : f32 to vector<1x4x4xf32>
    %14 = arith.mulf %11, %13 : vector<1x4x4xf32>
    "tpu.trace_start"() <{level = 10 : i32, message = "bcd,bdn->bcn"}> : () -> ()
    %cst_5 = arith.constant dense<0.000000e+00> : vector<1x4x256xf32>
    %15 = tpu.matmul %14, %0, %cst_5 {dimension_numbers = #tpu.dot_dimension_numbers<[2], [1], [1], [2], [0, 0, 0, 1, 1, 2], [0], [0]>} : vector<1x4x4xf32>, vector<1x4x256xf32>, vector<1x4x256xf32> -> vector<1x4x256xf32>
    "tpu.trace_stop"() : () -> ()
    %16 = arith.addf %15, %0 : vector<1x4x256xf32>
    %c0_6 = arith.constant 0 : index
    %c0_7 = arith.constant 0 : index
    %c0_8 = arith.constant 0 : index
    %17 = vector.load %arg3[%c0_6, %c0_7, %c0_8] : memref<1x4x256xf32, #tpu.memory_space<vmem>>, vector<1x4x256xf32>
    tpu.vector_store %arg3[%c0_6, %c0_7, %c0_8], %16 {strides = array<i32>} : memref<1x4x256xf32, #tpu.memory_space<vmem>>, vector<1x4x256xf32>,
    return
  }
  func.func @transform_0(%arg0: i32) -> i32 {
    %c0_i32 = arith.constant 0 : i32
    %c0_i32_0 = arith.constant 0 : i32
    return %c0_i32 : i32
  }
  func.func @transform_1(%arg0: i32) -> (i32, i32, i32) {
    %c0_i32 = arith.constant 0 : i32
    %c0_i32_0 = arith.constant 0 : i32
    %c0_i32_1 = arith.constant 0 : i32
    return %arg0, %c0_i32, %c0_i32_0 : i32, i32, i32
  }
  func.func @transform_2(%arg0: i32) -> (i32, i32, i32) {
    %c0_i32 = arith.constant 0 : i32
    %c0_i32_0 = arith.constant 0 : i32
    %c0_i32_1 = arith.constant 0 : i32
    return %arg0, %c0_i32, %c0_i32_0 : i32, i32, i32
  }
}

</mosaic_0001>

<bundles_post_ra>
// kernel: tpu_custom_call.1
= control target key start
LH: loop header
LB: loop body
LE: loop exit
PB: predicated region body
PF: predicated region fallthrough
CT: control target
= control target key end

     0   :  { %s775_s0 = inlined_call_operand.<no memory space> [shape: f32[1], index: 0, kind: input, shape index: {}]   ;;  %s776_s1 = inlined_call_operand.hbm [shape: f32[2,4,256], index: 1, kind: input, shape index: {}]   ;;  %s777_s2 = inlined_call_operand.hbm [shape: f32[2,4,256], index: 2, kind: output, shape index: {}]  }
   0x1   :  { %7 = sst [smem:[#allocation2]] %s775_s0 }
   0x2   :  { %8 = vsyncpa [#allocation4], 0 }
   0x3   :  { %10 = vsyncpa [#allocation4 + $0x1], 0 }
   0x4   :  { %11 = vsyncpa [#allocation5], 0 }
   0x5   :  { %13 = vsyncpa [#allocation5 + $0x1], 0  ;;  %s610_s11 = smov 0   ;;  %s612_s12 = smov 0  }
   0x6   :  { %s614_s13 = smov 0   ;;  %s616_s14 = smov 0  }
   0x7 LB: > { %s631_s0 = sadd.s32 4294967295, %s587_s14   ;;  %s420_s15 = sadd.s32 4294967294, %s587_s14   ;;  %s587_s14 = sphi %s616_s14, %s792_s14   ;;  %s583_s13 = sphi %s614_s13, %s791_s13   ;;  %s579_s12 = sphi %s612_s12, %s790_s12   ;;  %s575_s11 = sphi %s610_s11, %s789_s11  }
   0x8   : > { %s635_s16 = sadd.s32 1, %s587_s14   ;;  %s47_s17 = sadd.s32 1, %s583_s13 }
   0x9   : > { %s44_s18 = ssub.s32 %s587_s14, %s635_s16  ;;  %p54_p0 = scmp.ne.s32.totalorder %s583_s13, %s579_s12 }
   0xa   : > { %p45_p1 = scmp.eq.s32.totalorder %s44_s18, 0  ;;  %p55_p2 = scmp.eq.s32.totalorder %s587_s14, 0 }
   0xb   : > { %p60_p3 = scmp.ne.s32.totalorder %s579_s12, %s575_s11  ;;  %p61_p4 = scmp.eq.s32.totalorder %s631_s0, 0 }
   0xc   : > { %s647_s19 = scalar_select %p45_p1, %s583_s13, %s47_s17  }
   0xd   : > { %p649_p5 = por %p55_p2, %p54_p0  ;;  %p653_p6 = por %p61_p4, %p60_p3 }
   0xe   : > { %p84_p7 = scmp.eq.s32.totalorder %s631_s0, 1  ;;  %p90_p8 = scmp.eq.s32.totalorder %s420_s15, 1 }
   0xf   : > { %p451_p10 = scmp.lt.s32.totalorder %s587_s14, 2  ;;  %s113_s24 = sand.u32 1, %s583_s13  }
  0x10   : > { %p660_p11 = por %p84_p7, %p54_p0  ;;  %p664_p12 = por %p90_p8, %p60_p3 }
  0x11   : > { %s437_s25 = sshll.u32 %s587_s14, 7  ;;  %s423_s26 = sshll.u32 %s113_s24, 3 }
  0x12   : > { %s781_s22 = scalar_select %p660_p11, 1, 0 }
  0x13   : > { %s782_s23 = scalar_select %p664_p12, 1, 0 }
  0x14   : > { %s673_s29 = scalar_lea.hbm %s776_s1, %s437_s25  ;;  %s117_s30 = scalar_lea.vmem [#allocation3], %s423_s26 }
  0x15   : > { %s125_s3 = sshll.u32 %s117_s30, 4  ;;  %p677_p13 = pnand %p451_p10, %p649_p5  ;;  %s681_s3 = int_to_ptr.vmem [resolvable:$true] %s125_s3 }
  0x16   : > { %s114_s5 = scalar_lea.sflag [#allocation4], %s113_s24  ;;  %s491_s6 = scalar_lea.hbm %s673_s29, 128 }
  0x17   : > { %p492_p2 = scmp.ne.s32.totalorder %s673_s29, %s491_s6  ;;  %p493_p3 = pneg %p677_p13 }
  0x18   : > { %s496_s9 = scalar_lea.hbm %s776_s1, 256  ;;  %p497_p5 = scmp.lt.u32.totalorder %s673_s29, %s776_s1 }
  0x19   : > { %p494_p4 = pnand %p493_p3, %p492_p2  ;;  %p498_p8 = scmp.lt.u32.totalorder %s496_s9, %s491_s6 }
  0x1a   : > { %p500_p9 = scmp.lt.u32.totalorder %s491_s6, %s673_s29 }
  0x1b   : > { %p495_p7 = pneg %p494_p4  ;;  %p499_p10 = por %p498_p8, %p497_p5 }
  0x1d   : > { %p501_p0 = por %p500_p9, %p499_p10 }
  0x1f   : > { %p502_p1 = pnand %p501_p0, %p495_p7 }
  0x21   : > { %505 = shalt.err (!%p502_p1)
}
  0x22   : > { %s506_s17 = scalar_lea.vmem %s681_s3, 128  ;;  %s589_s18 = smov [#allocation3]  }
  0x23   : > { %p507_p2 = scmp.ne.s32.totalorder %s681_s3, %s506_s17  ;;  %s511_s20 = sshll.u32 %s589_s18, 4  ;;  %s512_s20 = int_to_ptr.vmem [resolvable:$false] %s511_s20 }
  0x24   : > { %s513_s24 = scalar_lea.vmem %s512_s20, 256  ;;  %p514_p11 = scmp.lt.s32.totalorder %s681_s3, %s512_s20 }
  0x25   : > { %p509_p4 = pnand %p507_p2, %p493_p3  ;;  %p515_p5 = scmp.lt.s32.totalorder %s513_s24, %s506_s17 }
  0x27   : > { %p510_p12 = pneg %p509_p4  ;;  %p516_p8 = por %p515_p5, %p514_p11 }
  0x29   : > { %p517_p9 = pnand %p516_p8, %p510_p12 }
  0x2b   : > { %520 = shalt.err (!%p517_p9)
}
  0x2c   : > { %446 = dma.hbm_to_vmem [thread:$0]  (!%p677_p13), %s673_s29, 128, %s681_s3, %s114_s5  }
  0x2d   : > { %p784_p0 = scmp.lt.s32.totalorder %s587_s14, 3  ;;  %p785_p1 = scmp.ge.s32.totalorder %s587_s14, 1 }
  0x2f   : > { %p131_p3 = pnand %p785_p1, %p784_p0 }
  0x30   : > { %s715_s25 = sand.u32 (!%p131_p3), 1, %s579_s12  }
  0x31   : > { %134 = sbr.rel (%p131_p3) target bundleno = 823 (0x337), region = 28  ;;  %s427_s26 = sshll.u32 (!%p131_p3), %s715_s25, 3 }
  0x32   : > { %s137_s27 = scalar_lea.sflag (!%p131_p3), [#allocation4], %s715_s25  ;;  %s140_s28 = scalar_lea.vmem (!%p131_p3), [#allocation3], %s427_s26 }
  0x38   : > { %566 = dma.done.wait (%p653_p6), %s137_s27, 128  }
  0x39   : > { %568 = vsyncadd (%p653_p6), %s137_s27, 4294967168  ;;  %v161_v0 = vld [vmem:[%s140_s28] sm:$0xff]  ;;  %vm235_vm0 = vcmask 27648   ;;  %vm254_vm1 = vcmask 1043456   ;;  %v590_v10 = vmov 0.0   ;;  %s247_s21 = sld [smem:[#allocation2]] }
  0x3a   : > { %v163_v1 = vcombine.high %v161_v0, %v161_v0  ;;  %323 = vmatprep.mubr.f32.mxu1 %v590_v10  ;;  %vm250_vm2 = vcmask 31744   ;;  %s438_s29 = sshll.u32 %s631_s0, 7  ;;  %s160_s30 = scalar_lea.vmem [#allocation6], %s427_s26 }
  0x3b   : > { %s350_s3 = sshll.u32 %s160_s30, 4  ;;  %s731_s6 = scalar_lea.hbm %s777_s2, %s438_s29  ;;  %s733_s3 = int_to_ptr.vmem [resolvable:$true] %s350_s3 }
  0x3c   : > { %165 = vmatprep.subr.mxu0 %v163_v1  ;;  %229 = vmatprep.mubr.f32.mxu0 %v163_v1  ;;  %s336_s7 = scalar_lea.sflag [#allocation5], %s715_s25  ;;  %s521_s8 = scalar_lea.vmem %s733_s3, 128 }
  0x3d   : > { %166 = vmatpush1.xpose.msra.mxu0 %v161_v0  ;;  %429 = vmatprep.subr.msk.mxu1 %vm254_vm1, %v163_v1  ;;  %p522_p6 = scmp.ne.s32.totalorder %s733_s3, %s521_s8  ;;  %p786_p11 = scmp.ne.s32.totalorder %s781_s22, 0 }
  0x3e   : > { %430 = vmatpush1.msk.msra.mxu1 %vm254_vm1, %v161_v0  ;;  %s591_s0 = smov [#allocation6]  }
  0x3f   : > { %v248_v13 = vstv %s247_s21  ;;  %p523_p12 = pnand %p522_p6, %p786_p11  ;;  %s525_s9 = sshll.u32 %s591_s0, 4  ;;  %s526_s9 = int_to_ptr.vmem [resolvable:$false] %s525_s9 }
  0x40   : > { %230 = vmatmul.mubr.f32.vlgmr.msra.gmra.mrb[0].mxu0 %v161_v0  ;;  %s527_s10 = scalar_lea.vmem %s526_s9, 256  ;;  %p528_p7 = scmp.lt.s32.totalorder %s733_s3, %s526_s9 }
  0x41   : > { %p524_p13 = pneg %p523_p12  ;;  %p529_p10 = scmp.lt.s32.totalorder %s527_s10, %s521_s8 }
  0x43   : > { %p530_p2 = por %p529_p10, %p528_p7 }
  0x45   : > { %p531_p4 = pnand %p530_p2, %p524_p13 }
 0x113   : > { %v231_v2 = vpop.f32.mrb[0].mxu0 }
 0x114   : > { %v233_v3 = vpop.f32.mrb[1].mxu0  ;;  %v236_v4 = vsel %vm235_vm0, %v231_v2, inf }
 0x115   : > { %237 = vmin.xlane.f32.xlu0 %v236_v4 }
 0x1a2   : > { %v238_v5 = vpop.xlane.xlu0 %237 }
 0x1a3   : > { %v239_v6 = vsub.f32 %v238_v5, %v231_v2 }
 0x1a5   : > { %v240_v7 = vmul.f32 1.442695, %v239_v6 }
 0x1a7   : > { %487 = vpow2.f32 %v240_v7 }
 0x1b1   : > { %v488_v8 = vpop.eup %487 }
 0x1b2   : > { %v242_v9 = vsel %vm235_vm0, %v488_v8, 0.0 }
 0x1b3   : > { %243 = vadd.xlane.f32.xlu0 %v242_v9 }
 0x240   : > { %v244_v11 = vpop.xlane.xlu0 %243 }
 0x241   : > { %489 = vrcp.f32 %v244_v11 }
 0x24b   : > { %v490_v12 = vpop.eup %489 }
 0x24c   : > { %v246_v14 = vmul.f32 %v490_v12, %v488_v8 }
 0x24e   : > { %v249_v15 = vmul.f32 %v248_v13, %v246_v14 }
 0x250   : > { %431 = vmatmul.mubr.msk.f32.vlgmr.msra.gmra.mrb[0].mxu1 %vm250_vm2, %v249_v15 }
 0x323   : > { %v325_v16 = vpop.f32.mrb[0].mxu1 }
 0x324   : > { %v326_v17 = vadd.f32 %v325_v16, %v161_v0  ;;  %v327_v18 = vpop.f32.mrb[1].mxu1 }
 0x325   : > { %v328_v19 = vadd.f32 %v327_v18, %v163_v1 }
 0x327   : > { %v332_v20 = vcombine.low %v326_v17, %v328_v19 }
 0x329   : > { %334 = vst [vmem:[%s160_s30] sm:$0xff] %v332_v20 }
 0x32a   : > { %534 = shalt.err (!%p531_p4)
}
 0x32b   : > { %s535_s15 = scalar_lea.hbm %s731_s6, 128  ;;  %s539_s20 = scalar_lea.hbm %s777_s2, 256 }
 0x32c   : > { %p536_p5 = scmp.ne.s32.totalorder %s731_s6, %s535_s15  ;;  %p540_p0 = scmp.lt.u32.totalorder %s731_s6, %s777_s2 }
 0x32d   : > { %p541_p1 = scmp.lt.u32.totalorder %s539_s20, %s535_s15  ;;  %p543_p6 = scmp.lt.u32.totalorder %s535_s15, %s731_s6 }
 0x32e   : > { %p537_p8 = pnand %p536_p5, %p786_p11 }
 0x32f   : > { %p542_p3 = por %p541_p1, %p540_p0 }
 0x330   : > { %p538_p9 = pneg %p537_p8 }
 0x331   : > { %p544_p12 = por %p543_p6, %p542_p3 }
 0x333   : > { %p545_p13 = pnand %p544_p12, %p538_p9 }
 0x335   : > { %548 = shalt.err (!%p545_p13)
}
 0x336   : > { %441 = dma.vmem_to_hbm [thread:$0]  (%p786_p11), %s733_s3, 128, %s731_s6, %s336_s7  }
 0x337 PF: > { %s362_s26 = sand.u32 1, %s575_s11   ;;  %p787_p7 = scmp.ne.s32.totalorder %s782_s23, 0 }
 0x338   : > { %p788_p10 = scmp.ge.s32.totalorder %s587_s14, 2  ;;  %s363_s27 = scalar_lea.sflag [#allocation5], %s362_s26 }
 0x33a   : > { %p448_p2 = pnand %p788_p10, %p787_p7 }
 0x33c   : > { %570 = dma.done.wait (!%p448_p2), %s363_s27, 128  }
 0x33d   : > { %572 = vsyncadd (!%p448_p2), %s363_s27, 4294967168  ;;  %p16_p4 = scmp.ge.s32.totalorder %s635_s16, 4   ;;  %s789_s11 = smov %s579_s12 }
 0x33e   : > { %s790_s12 = smov %s583_s13  ;;  %s791_s13 = smov %s647_s19 }
 0x33f   : > { %s792_s14 = smov %s635_s16  ;;  %18 = sbr.rel (!%p16_p4) target bundleno = 7 (0x7), region = 73 }
 0x346   :  { %368 = vsyncpa [#allocation4], 1 }
 0x347   :  { %370 = vsyncpa [#allocation4 + $0x1], 1 }
 0x348   :  { %371 = vsyncpa [#allocation5], 1 }
 0x349   :  { %373 = vsyncpa [#allocation5 + $0x1], 1 }

</bundles_post_ra>
